<compile_context>
chip_gen: v5e
topology: v5e:2x2
jax: 0.10.0
libtpu: 0.0.40
codegen_flags: <defaults>
</compile_context>

<pallas_src>
import jax
import jax.numpy as jnp
from jax.experimental import pallas as pl
from jax.experimental.pallas import tpu as pltpu


def _physical_vmem_bytes():
    """Per-core VMEM capacity (64 MiB v7x, 128 MiB v5e/v6e); safe fallback."""
    try:
        cap = int(pltpu.get_tpu_info().vmem_capacity_bytes)
        if cap >= (32 << 20):
            return cap
    except Exception:
        pass
    return 64 << 20          # conservative: smallest current-gen VMEM (v7x)


def _clamp_vmem(need_bytes, cap_bytes):
    return int(min(max(need_bytes, 32 << 20), cap_bytes))


# ---------------- fused single-pass kernel (fast path) ----------------------

def _se_fused_kernel(x_ref, w1_ref, w2_ref, o_ref):
    # x_ref / o_ref: (C, HW) one-batch NCHW slab (C on sublanes, HW on lanes)
    # w1_ref: (Cr, C) f32;  w2_ref: (C, Cr) f32
    x = x_ref[...]
    # Global average pool over the spatial (lane) axis, f32 accumulation.
    pooled = jnp.mean(x, axis=-1, keepdims=True, dtype=jnp.float32)      # (C, 1)
    # fc1 (1x1 conv, no bias) + ReLU -- column-vector matvec, no transposes.
    h = jnp.maximum(
        jnp.dot(w1_ref[...], pooled, preferred_element_type=jnp.float32),
        0.0)                                                             # (Cr, 1)
    # fc2 + sigmoid.
    s = jax.nn.sigmoid(
        jnp.dot(w2_ref[...], h, preferred_element_type=jnp.float32))     # (C, 1)
    # Per-channel rescale in the input dtype (scale broadcast along lanes).
    # Note: for bf16 inputs the gate is rounded to bf16 before the multiply;
    # numerically benign for SE (gate is in (0, 1)).
    o_ref[...] = (x * s.astype(x.dtype)).astype(o_ref.dtype)


# ---------------- tiled fallback: pass 1 (pure pooling stream) --------------

def _se_pool_kernel(x_ref, sum_ref):
    # x_ref: (t_c, HW);  sum_ref: (t_c, 1) f32 per-(batch, channel-tile) sums.
    sum_ref[...] = jnp.sum(x_ref[...], axis=-1, keepdims=True,
                           dtype=jnp.float32)


# ---------------- tiled fallback: pass 2 (pure scale stream) ----------------

def _se_scale_kernel(x_ref, s_ref, o_ref):
    # x_ref / o_ref: (t_c, HW);  s_ref: (t_c, 1) f32.
    x = x_ref[...]
    o_ref[...] = (x * s_ref[...].astype(x.dtype)).astype(o_ref.dtype)


# ---------------- wrapper ----------------------------------------------------

def se_block_pallas(x, w1, w2, *, block_budget_bytes=None):
    """SE block forward. x: (B, C, H, W); w1: (Cr, C, 1, 1); w2: (C, Cr, 1, 1)."""
    B, C, H, W = x.shape
    HW = H * W
    Cr = w1.shape[0]
    itemsize = jnp.dtype(x.dtype).itemsize

    # Stay NCHW: merging H,W is a free (contiguous) reshape -- no transposes.
    x3 = x.reshape(B, C, HW)
    w1f = w1.reshape(Cr, C).astype(jnp.float32)   # cast once, not per grid step
    w2f = w2.reshape(C, Cr).astype(jnp.float32)

    phys_vmem = _physical_vmem_bytes()
    vmem_cap = (phys_vmem * 7) // 8               # headroom under physical VMEM
    budget = vmem_cap if block_budget_bytes is None else int(block_budget_bytes)

    slab = C * HW * itemsize                      # one per-batch (C, HW) slab
    w_bytes = 4 * (w1f.size + w2f.size)
    # jnp.mean(dtype=f32) of a sub-32-bit block may materialize an f32 copy;
    # budget for it so the fused path never spills near the cap (v7x, 64 MiB).
    f32_copy = C * HW * 4 if itemsize < 4 else 0
    fused_need = 4 * slab + f32_copy + 2 * w_bytes + (2 << 20)

    if fused_need <= budget:
        # Fast path: single fused pass (x read once, written once -- the
        # roofline minimum).  grid=(B,) parallel so batches shard across
        # TensorCores on v7x.
        out3 = pl.pallas_call(
            _se_fused_kernel,
            out_shape=jax.ShapeDtypeStruct((B, C, HW), x.dtype),
            grid_spec=pltpu.PrefetchScalarGridSpec(
                num_scalar_prefetch=0,
                grid=(B,),
                in_specs=[
                    pl.BlockSpec((pl.Squeezed(), C, HW), lambda b: (b, 0, 0)),
                    pl.BlockSpec((Cr, C), lambda b: (0, 0)),
                    pl.BlockSpec((C, Cr), lambda b: (0, 0)),
                ],
                out_specs=pl.BlockSpec((pl.Squeezed(), C, HW),
                                       lambda b: (b, 0, 0)),
            ),
            compiler_params=pltpu.CompilerParams(
                dimension_semantics=("parallel",),
                vmem_limit_bytes=_clamp_vmem(fused_need, vmem_cap)),
        )(x3, w1f, w2f)
        return out3.reshape(B, C, H, W)

    # --- fallback: per-batch slab too big for VMEM -> two passes tiled over C.
    # Pass 1 is a pure pooling stream (no weights / MXU on its critical path);
    # the tiny excitation runs in plain JAX; pass 2 is a pure scale stream.
    # No HW padding / slicing: HW stays the full lane extent of every block.
    target_tile = min(4 << 20, max(budget // 4, 1))   # ~2-4 MiB saturates HBM BW
    t_c = (target_tile // max(HW * itemsize, 1)) // 8 * 8
    t_c = max(8, min(C, t_c))
    n_c = pl.cdiv(C, t_c)
    tile_bytes = t_c * HW * itemsize
    # TODO(synk): if even a t_c=8 tile overflows VMEM (enormous HW), a further
    # HW split of both passes would be needed; not implemented here.

    sums = pl.pallas_call(
        _se_pool_kernel,
        out_shape=jax.ShapeDtypeStruct((B, C, 1), jnp.float32),
        grid_spec=pltpu.PrefetchScalarGridSpec(
            num_scalar_prefetch=0,
            grid=(B, n_c),
            in_specs=[pl.BlockSpec((pl.Squeezed(), t_c, HW),
                                   lambda b, c: (b, c, 0))],
            out_specs=pl.BlockSpec((pl.Squeezed(), t_c, 1),
                                   lambda b, c: (b, c, 0)),
        ),
        compiler_params=pltpu.CompilerParams(
            dimension_semantics=("parallel", "parallel"),
            vmem_limit_bytes=_clamp_vmem(2 * tile_bytes + (2 << 20), vmem_cap)),
    )(x3)

    # Tiny excitation on the pooled (B, C) vector -- plain JAX, negligible.
    pooled = sums[:, :, 0] * (1.0 / float(HW))                    # (B, C) f32
    hmid = jnp.maximum(pooled @ w1f.T, 0.0)                       # (B, Cr)
    scales = jax.nn.sigmoid(hmid @ w2f.T)[:, :, None]             # (B, C, 1) f32

    out3 = pl.pallas_call(
        _se_scale_kernel,
        out_shape=jax.ShapeDtypeStruct((B, C, HW), x.dtype),
        grid_spec=pltpu.PrefetchScalarGridSpec(
            num_scalar_prefetch=0,
            grid=(B, n_c),
            in_specs=[
                pl.BlockSpec((pl.Squeezed(), t_c, HW), lambda b, c: (b, c, 0)),
                pl.BlockSpec((pl.Squeezed(), t_c, 1), lambda b, c: (b, c, 0)),
            ],
            out_specs=pl.BlockSpec((pl.Squeezed(), t_c, HW),
                                   lambda b, c: (b, c, 0)),
        ),
        compiler_params=pltpu.CompilerParams(
            dimension_semantics=("parallel", "parallel"),
            vmem_limit_bytes=_clamp_vmem(4 * tile_bytes + (2 << 20), vmem_cap)),
    )(x3, scales)
    return out3.reshape(B, C, H, W)


# ---------------- pure-JAX reference -----------------------------------------

def se_block_ref(x, w1, w2):
    B, C, H, W = x.shape
    Cr = w1.shape[0]
    y = jnp.mean(x, axis=(2, 3))                          # (B, C)
    y = jnp.maximum(y @ w1.reshape(Cr, C).T, 0.0)         # (B, Cr)
    y = jax.nn.sigmoid(y @ w2.reshape(C, Cr).T)           # (B, C)
    return x * y[:, :, None, None]


if __name__ == "__main__":
    B, C, H, W = 2, 32, 16, 16
    reduction_ratio = 16
    Cr = C // reduction_ratio

    key = jax.random.PRNGKey(0)
    kx, kx2, k1, k2 = jax.random.split(key, 4)
    x = jax.random.normal(kx, (B, C, H, W), dtype=jnp.float32)
    # Conv2d 1x1 weights (out_channels, in_channels, 1, 1), bias=False.
    w1 = 0.1 * jax.random.normal(k1, (Cr, C, 1, 1), dtype=jnp.float32)
    w2 = 0.1 * jax.random.normal(k2, (C, Cr, 1, 1), dtype=jnp.float32)

    ref = jax.block_until_ready(se_block_ref(x, w1, w2))

    # Fast fused single-pass path (generation-aware VMEM budget).
    out = jax.block_until_ready(se_block_pallas(x, w1, w2))
    assert out.shape == (B, C, H, W)
    assert jnp.allclose(out, ref, atol=1e-5, rtol=1e-5)

    # Force the tiled two-pass fallback (tiny budget) and check it too.
    out_tiled = jax.block_until_ready(
        se_block_pallas(x, w1, w2, block_budget_bytes=4096))
    assert jnp.allclose(out_tiled, ref, atol=1e-5, rtol=1e-5)

    # Non-multiple-of-128 spatial size (7x7) on both paths.
    x2 = jax.random.normal(kx2, (B, C, 7, 7), dtype=jnp.float32)
    ref2 = se_block_ref(x2, w1, w2)
    out2 = jax.block_until_ready(se_block_pallas(x2, w1, w2))
    assert jnp.allclose(out2, ref2, atol=1e-5, rtol=1e-5)
    out2_tiled = jax.block_until_ready(
        se_block_pallas(x2, w1, w2, block_budget_bytes=4096))
    assert jnp.allclose(out2_tiled, ref2, atol=1e-5, rtol=1e-5)

    print("KERNEL_OK")
</pallas_src>

<mosaic_0001>
module attributes {stable_mosaic.version = 11 : i64} {
  func.func @_se_fused_kernel(%arg0: i32, %arg1: memref<1x32x256xf32, #tpu.memory_space<vmem>>, %arg2: memref<2x32xf32, #tpu.memory_space<vmem>>, %arg3: memref<32x2xf32, #tpu.memory_space<vmem>>, %arg4: memref<1x32x256xf32, #tpu.memory_space<vmem>>) attributes {dimension_semantics = [#tpu.dimension_semantics<parallel>], iteration_bounds = array<i64: 2>, scalar_prefetch = 0 : i64, scratch_operands = 0 : i64, tpu.core_type = #tpu.core_type<tc>, window_params = [{transform_indices = @transform_0, window_bounds = array<i64: 1, 32, 256>}, {pipeline_mode = #tpu.pipeline_mode<synchronous>, transform_indices = @transform_1, window_bounds = array<i64: 2, 32>}, {pipeline_mode = #tpu.pipeline_mode<synchronous>, transform_indices = @transform_2, window_bounds = array<i64: 32, 2>}, {transform_indices = @transform_3, window_bounds = array<i64: 1, 32, 256>}]} {
    %c0 = arith.constant 0 : index
    %c0_0 = arith.constant 0 : index
    %c0_1 = arith.constant 0 : index
    %0 = vector.load %arg1[%c0, %c0_0, %c0_1] : memref<1x32x256xf32, #tpu.memory_space<vmem>>, vector<1x32x256xf32>
    %1 = vector.shape_cast %0 : vector<1x32x256xf32> to vector<32x256xf32>
    %cst = arith.constant dense<0.000000e+00> : vector<32xf32>
    %2 = vector.multi_reduction <add>, %1, %cst [1] : vector<32x256xf32> to vector<32xf32>
    %3 = vector.shape_cast %2 : vector<32xf32> to vector<32x1xf32>
    %cst_2 = arith.constant 2.560000e+02 : f32
    %4 = vector.broadcast %cst_2 : f32 to vector<32x1xf32>
    %5 = arith.divf %3, %4 : vector<32x1xf32>
    %c0_3 = arith.constant 0 : index
    %c0_4 = arith.constant 0 : index
    %6 = vector.load %arg2[%c0_3, %c0_4] : memref<2x32xf32, #tpu.memory_space<vmem>>, vector<2x32xf32>
    %cst_5 = arith.constant dense<0.000000e+00> : vector<2x1xf32>
    %7 = tpu.matmul %6, %5, %cst_5 {dimension_numbers = #tpu.dot_dimension_numbers<[1], [0], [0], [1], [0, 0, 1, 1], [], []>} : vector<2x32xf32>, vector<32x1xf32>, vector<2x1xf32> -> vector<2x1xf32>
    %cst_6 = arith.constant 0.000000e+00 : f32
    %8 = vector.broadcast %cst_6 : f32 to vector<2x1xf32>
    %9 = arith.maximumf %7, %8 : vector<2x1xf32>
    %c0_7 = arith.constant 0 : index
    %c0_8 = arith.constant 0 : index
    %10 = vector.load %arg3[%c0_7, %c0_8] : memref<32x2xf32, #tpu.memory_space<vmem>>, vector<32x2xf32>
    %cst_9 = arith.constant dense<0.000000e+00> : vector<32x1xf32>
    %11 = tpu.matmul %10, %9, %cst_9 {dimension_numbers = #tpu.dot_dimension_numbers<[1], [0], [0], [1], [0, 0, 1, 1], [], []>} : vector<32x2xf32>, vector<2x1xf32>, vector<32x1xf32> -> vector<32x1xf32>
    %12 = arith.negf %11 : vector<32x1xf32>
    %13 = math.exp %12 : vector<32x1xf32>
    %cst_10 = arith.constant 1.000000e+00 : f32
    %14 = vector.broadcast %cst_10 : f32 to vector<32x1xf32>
    %15 = arith.addf %14, %13 : vector<32x1xf32>
    %16 = arith.divf %14, %15 : vector<32x1xf32>
    %17 = vector.broadcast %16 : vector<32x1xf32> to vector<32x256xf32>
    %18 = arith.mulf %1, %17 : vector<32x256xf32>
    %c0_11 = arith.constant 0 : index
    %c0_12 = arith.constant 0 : index
    %c0_13 = arith.constant 0 : index
    %19 = vector.load %arg4[%c0_11, %c0_12, %c0_13] : memref<1x32x256xf32, #tpu.memory_space<vmem>>, vector<1x32x256xf32>
    %20 = vector.shape_cast %19 : vector<1x32x256xf32> to vector<32x256xf32>
    %21 = vector.shape_cast %18 : vector<32x256xf32> to vector<1x32x256xf32>
    tpu.vector_store %arg4[%c0_11, %c0_12, %c0_13], %21 {strides = array<i32>} : memref<1x32x256xf32, #tpu.memory_space<vmem>>, vector<1x32x256xf32>,
    return
  }
  func.func @transform_0(%arg0: i32) -> (i32, i32, i32) {
    %c0_i32 = arith.constant 0 : i32
    %c0_i32_0 = arith.constant 0 : i32
    %c0_i32_1 = arith.constant 0 : i32
    return %arg0, %c0_i32, %c0_i32_0 : i32, i32, i32
  }
  func.func @transform_1(%arg0: i32) -> (i32, i32) {
    %c0_i32 = arith.constant 0 : i32
    %c0_i32_0 = arith.constant 0 : i32
    %c0_i32_1 = arith.constant 0 : i32
    return %c0_i32, %c0_i32_0 : i32, i32
  }
  func.func @transform_2(%arg0: i32) -> (i32, i32) {
    %c0_i32 = arith.constant 0 : i32
    %c0_i32_0 = arith.constant 0 : i32
    %c0_i32_1 = arith.constant 0 : i32
    return %c0_i32, %c0_i32_0 : i32, i32
  }
  func.func @transform_3(%arg0: i32) -> (i32, i32, i32) {
    %c0_i32 = arith.constant 0 : i32
    %c0_i32_0 = arith.constant 0 : i32
    %c0_i32_1 = arith.constant 0 : i32
    return %arg0, %c0_i32, %c0_i32_0 : i32, i32, i32
  }
}

</mosaic_0001>

<bundles_post_ra>
// kernel: tpu_custom_call.1
= control target key start
LH: loop header
LB: loop body
LE: loop exit
PB: predicated region body
PF: predicated region fallthrough
CT: control target
= control target key end

     0   :  { %8 = vsyncpa [#allocation3], 0  ;;  %s902_s0 = inlined_call_operand.hbm [shape: f32[2,32,256], index: 0, kind: input, shape index: {}]   ;;  %s903_s1 = inlined_call_operand.vmem [shape: f32[2,32], index: 1, kind: input, shape index: {}]   ;;  %s904_s2 = inlined_call_operand.vmem [shape: f32[32,2], index: 2, kind: input, shape index: {}]   ;;  %s905_s3 = inlined_call_operand.hbm [shape: f32[2,32,256], index: 3, kind: output, shape index: {}]  }
   0x1   :  { %10 = vsyncpa [#allocation3 + $0x1], 0 }
   0x2   :  { %11 = vsyncpa [#allocation4], 0 }
   0x3   :  { %13 = vsyncpa [#allocation4 + $0x1], 0  ;;  %s724_s12 = smov 0   ;;  %s726_s13 = smov 0  }
   0x4   :  { %s728_s14 = smov 0   ;;  %s730_s15 = smov 0  }
   0x5 LB: > { %s745_s16 = sadd.s32 4294967295, %s696_s15   ;;  %s499_s17 = sadd.s32 4294967294, %s696_s15   ;;  %s696_s15 = sphi %s730_s15, %s915_s15   ;;  %s692_s14 = sphi %s728_s14, %s914_s14   ;;  %s688_s13 = sphi %s726_s13, %s913_s13   ;;  %s684_s12 = sphi %s724_s12, %s912_s12  }
   0x6   : > { %s749_s18 = sadd.s32 1, %s696_s15   ;;  %s26_s19 = sadd.s32 1, %s692_s14 }
   0x7   : > { %s23_s20 = ssub.s32 %s696_s15, %s749_s18  ;;  %p33_p0 = scmp.ne.s32.totalorder %s692_s14, %s688_s13 }
   0x8   : > { %p24_p1 = scmp.eq.s32.totalorder %s23_s20, 0  ;;  %p34_p2 = scmp.eq.s32.totalorder %s696_s15, 0 }
   0x9   : > { %p39_p3 = scmp.ne.s32.totalorder %s688_s13, %s684_s12  ;;  %p40_p4 = scmp.eq.s32.totalorder %s745_s16, 0 }
   0xa   : > { %s761_s21 = scalar_select %p24_p1, %s692_s14, %s26_s19  }
   0xb   : > { %p763_p5 = por %p34_p2, %p33_p0  ;;  %p767_p6 = por %p40_p4, %p39_p3 }
   0xc   : > { %p105_p7 = scmp.eq.s32.totalorder %s745_s16, 1  ;;  %p111_p8 = scmp.eq.s32.totalorder %s499_s17, 1 }
   0xd   : > { %p539_p10 = scmp.lt.s32.totalorder %s696_s15, 2  ;;  %s137_s26 = sand.u32 1, %s692_s14  }
   0xe   : > { %p774_p11 = por %p105_p7, %p33_p0  ;;  %p778_p12 = por %p111_p8, %p39_p3 }
   0xf   : > { %s523_s27 = sshll.u32 %s696_s15, 6  ;;  %s502_s28 = sshll.u32 %s137_s26, 6 }
  0x10   : > { %s146_s4 = scalar_lea.hbm %s902_s0, %s523_s27  ;;  %s141_s6 = scalar_lea.vmem [#allocation2], %s502_s28 }
  0x11   : > { %s147_s5 = sshll.u32 %s146_s4, 4  ;;  %s149_s7 = sshll.u32 %s141_s6, 4  ;;  %s148_s5 = int_to_ptr.hbm [resolvable:$true] %s147_s5  ;;  %s150_s7 = int_to_ptr.vmem [resolvable:$true] %s149_s7 }
  0x12   : > { %p789_p13 = pnand %p539_p10, %p763_p5  ;;  %p505_p0 = scmp.ge.s32.totalorder %s696_s15, 1 }
  0x13   : > { %p157_p1 = scmp.lt.s32.totalorder %s696_s15, 3  ;;  %s138_s9 = scalar_lea.sflag [#allocation3], %s137_s26 }
  0x14   : > { %s600_s10 = sshra.s32 %s148_s5, 4  ;;  %p604_p3 = pneg %p789_p13  ;;  %s601_s10 = int_to_ptr.hbm [resolvable:$true] %s600_s10 }
  0x15   : > { %s602_s11 = scalar_lea.hbm %s601_s10, 64  ;;  %s607_s20 = scalar_lea.hbm %s902_s0, 128 }
  0x16   : > { %p603_p2 = scmp.ne.s32.totalorder %s601_s10, %s602_s11  ;;  %p608_p5 = scmp.lt.s32.totalorder %s601_s10, %s902_s0 }
  0x17   : > { %p609_p8 = scmp.lt.s32.totalorder %s607_s20, %s602_s11 }
  0x18   : > { %p605_p4 = pnand %p604_p3, %p603_p2 }
  0x19   : > { %p610_p10 = por %p609_p8, %p608_p5 }
  0x1a   : > { %p606_p7 = pneg %p605_p4 }
  0x1c   : > { %p611_p9 = pnand %p610_p10, %p606_p7 }
  0x1e   : > { %614 = shalt.err (!%p611_p9)
}
  0x1f   : > { %s698_s26 = smov 256   ;;  %s699_s28 = smov 16  }
  0x20   : > { %534 = dma.hbm_to_vmem [thread:$0]  (!%p789_p13), %s148_s5, 1024, %s150_s7, %s138_s9, %s698_s26, %s698_s26, %s699_s28  }
  0x21   : > { %p158_p2 = pnand %p505_p0, %p157_p1 }
  0x22   : > { %s810_s29 = sand.u32 (!%p158_p2), 1, %s688_s13  }
  0x23   : > { %161 = sbr.rel (%p158_p2) target bundleno = 595 (0x253), region = 32  ;;  %s506_s30 = sshll.u32 (!%p158_p2), %s810_s29, 6 }
  0x24   : > { %s164_s4 = scalar_lea.sflag (!%p158_p2), [#allocation3], %s810_s29  ;;  %s167_s6 = scalar_lea.vmem (!%p158_p2), [#allocation2], %s506_s30 }
  0x28   : > { %675 = dma.done.wait (%p767_p6), %s164_s4, 1024  }
  0x29   : > { %677 = vsyncadd (%p767_p6), %s164_s4, 4294966272  ;;  %v820_v0 = vld [vmem:[%s167_s6 + $0x30] sm:$0xff]  ;;  %v822_v1 = vld [vmem:[%s167_s6 + $0x38] sm:$0xff]  ;;  %v700_v12 = vmov 256.0   ;;  %vm223_vm1 = vcmask 261120   ;;  %vm265_vm2 = vcmask 1041408  }
  0x2a   : > { %v824_v2 = vld [vmem:[%s167_s6 + $0x10] sm:$0xff]  ;;  %v208_v3 = vadd.f32 %v822_v1, %v820_v0  ;;  %v828_v4 = vld [vmem:[%s167_s6 + $0x18] sm:$0xff]  ;;  %v832_v6 = vld [vmem:[%s167_s6 + $0x20] sm:$0xff]  ;;  %582 = vrcp.f32 %v700_v12  ;;  %vm252_vm3 = vcmask 15360   ;;  %v701_v34 = vmov 0   ;;  %s190_s22 = scalar_lea.vmem [#allocation5], %s506_s30 }
  0x2b   : > { %v202_v5 = vadd.f32 %v828_v4, %v824_v2  ;;  %v834_v7 = vld [vmem:[%s167_s6 + $0x28] sm:$0xff]  ;;  %v836_v8 = vld [vmem:[%s167_s6] sm:$0xff]  ;;  %v251_v32 = vld [vmem:[%s904_s2 + $0x18] sm:$0xff]  ;;  %579 = vset.pattern.permute.xlu2 %v701_v34  ;;  %581 = vset.pattern.permute.xlu1 %v701_v34  ;;  %s524_s27 = sshll.u32 %s745_s16, 6  ;;  %s423_s4 = sshll.u32 %s190_s22, 4  ;;  %s424_s4 = int_to_ptr.vmem [resolvable:$true] %s423_s4 }
  0x2c   : > { %209 = vadd.xlane.f32.xlu0 %v208_v3  ;;  %v838_v9 = vld [vmem:[%s167_s6 + $0x8] sm:$0xff]  ;;  %v205_v10 = vadd.f32 %v834_v7, %v832_v6  ;;  %v222_v27 = vld [vmem:[%s903_s1] sm:$0x3]  ;;  %v250_v33 = vld [vmem:[%s904_s2 + $0x10] sm:$0xff]  ;;  %s422_s30 = scalar_lea.hbm %s905_s3, %s524_s27  ;;  %s411_s16 = scalar_lea.sflag [#allocation4], %s810_s29 }
  0x2d   : > { %203 = vadd.xlane.f32.xlu1 %v202_v5  ;;  %v199_v11 = vadd.f32 %v838_v9, %v836_v8  ;;  %v248_v30 = vld [vmem:[%s904_s2] sm:$0xff]  ;;  %v249_v31 = vld [vmem:[%s904_s2 + $0x8] sm:$0xff]  ;;  %580 = vset.pattern.permute.xlu0 %v701_v34  ;;  %s425_s6 = sshll.u32 %s422_s30, 4  ;;  %s650_s9 = scalar_lea.hbm %s905_s3, 128  ;;  %s426_s6 = int_to_ptr.hbm [resolvable:$true] %s425_s6 }
  0x2e   : > { %s644_s23 = sshra.s32 %s426_s6, 4  ;;  %s645_s23 = int_to_ptr.hbm [resolvable:$true] %s644_s23 }
  0x2f   : > { %s646_s5 = scalar_lea.hbm %s645_s23, 64  ;;  %p651_p0 = scmp.lt.s32.totalorder %s645_s23, %s905_s3 }
  0x30   : > { %v583_v13 = vpop.eup %582  ;;  %p647_p6 = scmp.ne.s32.totalorder %s645_s23, %s646_s5  ;;  %p652_p1 = scmp.lt.s32.totalorder %s650_s9, %s646_s5 }
  0x31   : > { %v212_v14 = vmul.f32 256.0, %v583_v13  ;;  %vm216_vm0 = vweird.f32 %v583_v13 }
  0x32   : > { %p648_p9 = pnand %p647_p6, %p774_p11  ;;  %p653_p3 = por %p652_p1, %p651_p0 }
  0x33   : > { %v213_v15 = vsub.f32 1.0, %v212_v14 }
  0x34   : > { %206 = vadd.xlane.f32.xlu0 %v205_v10  ;;  %p649_p13 = pneg %p648_p9 }
  0x35   : > { %200 = vadd.xlane.f32.xlu1 %v199_v11  ;;  %v214_v16 = vmul.f32 %v583_v13, %v213_v15 }
  0x36   : > { %p654_p4 = pnand %p653_p3, %p649_p13 }
  0x37   : > { %v215_v17 = vadd.f32 %v583_v13, %v214_v16 }
  0x39   : > { %v217_v18 = vsel %vm216_vm0, %v583_v13, %v215_v17 }
  0x9f   : > { %v210_v19 = vpop.xlane.xlu0 %209 }
  0xa0   : > { %v221_v20 = vmul.f32 %v217_v18, %v210_v19  ;;  %v204_v21 = vpop.xlane.xlu1 %203 }
  0xa1   : > { %v219_v25 = vmul.f32 %v217_v18, %v204_v21 }
  0xa2   : > { %239 = vmatpush.msra.mxu0 %v221_v20 }
  0xa7   : > { %v207_v22 = vpop.xlane.xlu0 %206 }
  0xa8   : > { %v220_v23 = vmul.f32 %v217_v18, %v207_v22  ;;  %v201_v24 = vpop.xlane.xlu1 %200 }
  0xa9   : > { %v218_v26 = vmul.f32 %v217_v18, %v201_v24 }
  0xaa   : > { %240 = vmatpush.msra.mxu0 %v220_v23 }
  0xac   : > { %241 = vmatpush.msra.mxu0 %v219_v25 }
  0xae   : > { %242 = vmatpush.msra.mxu0 %v218_v26 }
  0xaf   : > { %508 = vmatmul.msk.f32.vlgmr.msra.gmra.mxu0 %vm223_vm1, %v222_v27 }
 0x12c   : > { %v244_v28 = vpop.f32.mrf.mxu0 }
 0x12d   : > { %v247_v29 = vmax.f32 %v244_v28, 0.0 }
 0x12f   : > { %509 = vmatpush.msk.msra.mxu1 %vm265_vm2, %v247_v29  ;;  %525 = vmatpush.msk.msra.mxu2 %vm265_vm2, %v247_v29 }
 0x130   : > { %526 = vmatpush.msk.msra.mxu3 %vm265_vm2, %v247_v29  ;;  %510 = vmatmul.msk.f32.vlgmr.msra.gmra.mxu1 %vm252_vm3, %v248_v30 }
 0x131   : > { %511 = vmatmul.msk.f32.vlgmr.msra.gmra.mxu2 %vm252_vm3, %v249_v31  ;;  %513 = vmatmul.msk.f32.vlgmr.msra.gmra.mxu3 %vm252_vm3, %v251_v32 }
 0x139   : > { %512 = vmatmul.msk.f32.gmra.mxu2 %vm252_vm3, %v250_v33 }
 0x1ad   : > { %v286_v35 = vpop.f32.mrf.mxu1 }
 0x1ae   : > { %v514_v36 = vmul.f32 -1.442695, %v286_v35 }
 0x1b0   : > { %584 = vpow2.f32 %v514_v36 }
 0x1b4   : > { %v289_v37 = vpop.f32.mrf.mxu2  ;;  %v295_v38 = vpop.f32.mrf.mxu3 }
 0x1b5   : > { %v515_v39 = vmul.f32 -1.442695, %v289_v37  ;;  %v517_v40 = vmul.f32 -1.442695, %v295_v38 }
 0x1b6   : > { %v585_v41 = vpop.eup %584 }
 0x1b7   : > { %v310_v42 = vadd.f32 1.0, %v585_v41  ;;  %586 = vpow2.f32 %v515_v39 }
 0x1b8   : > { %588 = vpow2.f32 %v517_v40 }
 0x1b9   : > { %590 = vrcp.f32 %v310_v42  ;;  %v325_v51 = vand.u32 2147483648, %v310_v42  ;;  %vm319_vm4 = vweird.f32 %v310_v42  ;;  %v323_v53 = vand.u32 2147483647, %v310_v42 }
 0x1bb   : > { %v326_v56 = vor.u32 1.1754944e-38, %v325_v51  ;;  %vm324_vm7 = vcmp.eq.f32.partialorder %v323_v53, 8.507059e+37 }
 0x1bc   : > { %v292_v43 = vpop.f32.mrf.mxu2 }
 0x1bd   : > { %v587_v44 = vpop.eup %586  ;;  %v516_v45 = vmul.f32 -1.442695, %v292_v43 }
 0x1be   : > { %v589_v46 = vpop.eup %588  ;;  %v311_v47 = vadd.f32 1.0, %v587_v44 }
 0x1bf   : > { %v591_v48 = vpop.eup %590  ;;  %v313_v49 = vadd.f32 1.0, %v589_v46  ;;  %592 = vpow2.f32 %v516_v45 }
 0x1c0   : > { %594 = vrcp.f32 %v311_v47  ;;  %v315_v50 = vmul.f32 %v591_v48, %v310_v42  ;;  %vm320_vm5 = vweird.f32 %v591_v48  ;;  %v340_v13 = vand.u32 2147483648, %v311_v47 }
 0x1c1   : > { %596 = vrcp.f32 %v313_v49  ;;  %vm321_vm6 = vmor %vm319_vm4, %vm320_vm5  ;;  %vm364_vm8 = vweird.f32 %v313_v49  ;;  %v370_v11 = vand.u32 2147483648, %v313_v49  ;;  %v368_v15 = vand.u32 2147483647, %v313_v49 }
 0x1c2   : > { %v316_v52 = vsub.f32 1.0, %v315_v50  ;;  %v338_v16 = vand.u32 2147483647, %v311_v47  ;;  %vm334_vm11 = vweird.f32 %v311_v47  ;;  %v341_v22 = vor.u32 1.1754944e-38, %v340_v13 }
 0x1c3   : > { %v371_v20 = vor.u32 1.1754944e-38, %v370_v11  ;;  %vm369_vm14 = vcmp.eq.f32.partialorder %v368_v15, 8.507059e+37 }
 0x1c4   : > { %v317_v54 = vmul.f32 %v591_v48, %v316_v52  ;;  %vm339_vm15 = vcmp.eq.f32.partialorder %v338_v16, 8.507059e+37 }
 0x1c5   : > { %v593_v55 = vpop.eup %592 }
 0x1c6   : > { %v595_v57 = vpop.eup %594  ;;  %v312_v58 = vadd.f32 1.0, %v593_v55  ;;  %v318_v59 = vadd.f32 %v591_v48, %v317_v54 }
 0x1c7   : > { %v597_v60 = vpop.eup %596  ;;  %v330_v61 = vmul.f32 %v595_v57, %v311_v47  ;;  %vm335_vm9 = vweird.f32 %v595_v57 }
 0x1c8   : > { %598 = vrcp.f32 %v312_v58  ;;  %v322_v62 = vsel %vm321_vm6, %v591_v48, %v318_v59  ;;  %v360_v63 = vmul.f32 %v597_v60, %v313_v49  ;;  %vm365_vm10 = vweird.f32 %v597_v60  ;;  %vm336_vm12 = vmor %vm334_vm11, %vm335_vm9 }
 0x1c9   : > { %v327_v3 = vsel %vm324_vm7, %v326_v56, %v322_v62  ;;  %v331_v5 = vsub.f32 1.0, %v330_v61  ;;  %vm366_vm13 = vmor %vm364_vm8, %vm365_vm10  ;;  %v355_v28 = vand.u32 2147483648, %v312_v58  ;;  %v353_v30 = vand.u32 2147483647, %v312_v58 }
 0x1ca   : > { %376 = vperm.xlu2 %579, %v327_v3   ;;  %v361_v10 = vsub.f32 1.0, %v360_v63  ;;  %vm349_vm1 = vweird.f32 %v312_v58 }
 0x1cb   : > { %v332_v12 = vmul.f32 %v595_v57, %v331_v5  ;;  %v356_v32 = vor.u32 1.1754944e-38, %v355_v28  ;;  %vm354_vm3 = vcmp.eq.f32.partialorder %v353_v30, 8.507059e+37 }
 0x1cc   : > { %v362_v14 = vmul.f32 %v597_v60, %v361_v10 }
 0x1cd   : > { %v333_v17 = vadd.f32 %v595_v57, %v332_v12 }
 0x1ce   : > { %v599_v18 = vpop.eup %598  ;;  %v363_v19 = vadd.f32 %v597_v60, %v362_v14 }
 0x1cf   : > { %v337_v21 = vsel %vm336_vm12, %v595_v57, %v333_v17  ;;  %v345_v23 = vmul.f32 %v599_v18, %v312_v58  ;;  %vm350_vm0 = vweird.f32 %v599_v18 }
 0x1d0   : > { %v367_v24 = vsel %vm366_vm13, %v597_v60, %v363_v19  ;;  %v342_v26 = vsel %vm339_vm15, %v341_v22, %v337_v21  ;;  %vm351_vm2 = vmor %vm349_vm1, %vm350_vm0 }
 0x1d1   : > { %v372_v25 = vsel %vm369_vm14, %v371_v20, %v367_v24  ;;  %v346_v27 = vsub.f32 1.0, %v345_v23 }
 0x1d2   : > { %391 = vperm.xlu1 %581, %v372_v25   ;;  %381 = vperm.xlu2 %579, %v342_v26  }
 0x1d3   : > { %v347_v29 = vmul.f32 %v599_v18, %v346_v27 }
 0x1d5   : > { %v348_v31 = vadd.f32 %v599_v18, %v347_v29 }
 0x1d7   : > { %v352_v33 = vsel %vm351_vm2, %v599_v18, %v348_v31 }
 0x1d8   : > { %v357_v34 = vsel %vm354_vm3, %v356_v32, %v352_v33 }
 0x1d9   : > { %386 = vperm.xlu0 %580, %v357_v34  }
 0x224   : > { %v377_v35 = vpop.permute.xlu2 %376 }
 0x225   : > { %v394_v36 = vmul.f32 %v377_v35, %v836_v8  ;;  %v395_v37 = vmul.f32 %v377_v35, %v838_v9 }
 0x227   : > { %402 = vst [vmem:[%s190_s22] sm:$0xff] %v394_v36 }
 0x228   : > { %403 = vst [vmem:[%s190_s22 + $0x8] sm:$0xff] %v395_v37 }
 0x22c   : > { %v382_v38 = vpop.permute.xlu2 %381 }
 0x22d   : > { %v396_v39 = vmul.f32 %v382_v38, %v824_v2  ;;  %v397_v40 = vmul.f32 %v382_v38, %v828_v4 }
 0x22f   : > { %404 = vst [vmem:[%s190_s22 + $0x10] sm:$0xff] %v396_v39 }
 0x230   : > { %405 = vst [vmem:[%s190_s22 + $0x18] sm:$0xff] %v397_v40 }
 0x244   : > { %v392_v41 = vpop.permute.xlu1 %391 }
 0x245   : > { %v400_v42 = vmul.f32 %v392_v41, %v820_v0  ;;  %v401_v8 = vmul.f32 %v392_v41, %v822_v1 }
 0x247   : > { %408 = vst [vmem:[%s190_s22 + $0x30] sm:$0xff] %v400_v42 }
 0x248   : > { %409 = vst [vmem:[%s190_s22 + $0x38] sm:$0xff] %v401_v8 }
 0x24b   : > { %v387_v2 = vpop.permute.xlu0 %386 }
 0x24c   : > { %v398_v4 = vmul.f32 %v387_v2, %v832_v6  ;;  %v399_v9 = vmul.f32 %v387_v2, %v834_v7 }
 0x24e   : > { %406 = vst [vmem:[%s190_s22 + $0x20] sm:$0xff] %v398_v4 }
 0x24f   : > { %407 = vst [vmem:[%s190_s22 + $0x28] sm:$0xff] %v399_v9 }
 0x250   : > { %657 = shalt.err (!%p654_p4)
}
 0x251   : > { %s702_s29 = smov 256   ;;  %s703_s17 = smov 16  }
 0x252   : > { %529 = dma.vmem_to_hbm [thread:$0]  (%p774_p11), %s424_s4, 1024, %s426_s6, %s411_s16, %s702_s29, %s702_s29, %s703_s17  }
 0x253 PF: > { %s440_s19 = sand.u32 1, %s684_s12   ;;  %p911_p7 = scmp.ge.s32.totalorder %s696_s15, 2 }
 0x254   : > { %s441_s20 = scalar_lea.sflag [#allocation4], %s440_s19 }
 0x255   : > { %p536_p5 = pnand %p911_p7, %p778_p12 }
 0x257   : > { %p537_p8 = pneg %p536_p5 }
 0x259   : > { %679 = dma.done.wait (%p537_p8), %s441_s20, 1024  }
 0x25a   : > { %681 = vsyncadd (%p537_p8), %s441_s20, 4294966272  ;;  %p16_p10 = scmp.ge.s32.totalorder %s749_s18, 4   ;;  %s912_s12 = smov %s688_s13 }
 0x25b   : > { %s913_s13 = smov %s692_s14  ;;  %s914_s14 = smov %s761_s21 }
 0x25c   : > { %s915_s15 = smov %s749_s18  ;;  %18 = sbr.rel (!%p16_p10) target bundleno = 5 (0x5), region = 77 }
 0x261   :  { %447 = vsyncpa [#allocation3], 1 }
 0x262   :  { %449 = vsyncpa [#allocation3 + $0x1], 1 }
 0x263   :  { %450 = vsyncpa [#allocation4], 1 }
 0x264   :  { %452 = vsyncpa [#allocation4 + $0x1], 1 }

</bundles_post_ra>
